<compile_context>
chip_gen: v6e
topology: v6e:2x2x1
jax: 0.10.0
libtpu: 0.0.40
codegen_flags: <defaults>
</compile_context>

<pallas_src>
import jax
import jax.numpy as jnp
from jax import lax
from jax.experimental import pallas as pl
from jax.experimental.pallas import tpu as pltpu

# Small synthetic shapes consistent with the module's forward pass.
B = 2    # batch (number of texts)
E = 4    # number of expert models (len(model_names))
D = 32   # per-expert backbone output dim (uniform synthetic stand-in for 384/768)
H = 32   # hidden_dim of the shared projection space
K = 2    # top-k experts

# Lane-dense packed output slab layout (width = multiple of 128 → unmasked vst,
# single output DMA instead of six sub-512B ones).
SLAB_W = 256
_OFF_STACKED = 0                         # E*H = 128  normalized expert features
_OFF_COMBINED = _OFF_STACKED + E * H     # 128        combined_features (H)
_OFF_SIMS = _OFF_COMBINED + H            # 160        similarities (E*E)
_OFF_PROBS = _OFF_SIMS + E * E           # 176        routing_probs (E)
_OFF_TOPW = _OFF_PROBS + E               # 180        top-k weights (K)
_OFF_IDX = _OFF_TOPW + K                 # 182        top-k indices as f32 (K)
_USED = _OFF_IDX + K                     # 184
_PAD = SLAB_W - _USED                    # 72         zero padding
assert _PAD >= 0


# ----------------------------------------------------------------------------
# Fused kernel: block-diagonal projection GEMM + normalize + similarity
# routing + top-k combine. Single program; everything fits trivially in VMEM.
# ----------------------------------------------------------------------------
def _text_encoder_kernel(inv_temp_ref, feats_ref, w_ref, out_ref):
    # ---- all-expert projection as one block-diagonal GEMM -------------------
    x = feats_ref[...]                    # (B, E*D) lane-dense packed features
    w = w_ref[...]                        # (E*D, E*H) block-diag, pre-transposed
    proj = jnp.dot(x, w, preferred_element_type=jnp.float32)     # (B, E*H)

    # ---- per-expert L2 normalize (F.normalize(dim=-1)) on static lane slices
    rows = []
    for e in range(E):
        y = proj[:, e * H:(e + 1) * H]                            # (B, H)
        sumsq = jnp.sum(y * y, axis=-1, keepdims=True)
        # y / max(||y||, 1e-12) == y * rsqrt(max(||y||^2, 1e-24))
        rows.append(y * lax.rsqrt(jnp.maximum(sumsq, 1e-24)))
    s3 = jnp.stack(rows, axis=1)                                  # (B, E, H)

    # ---- similarity routing --------------------------------------------------
    inv_temp = inv_temp_ref[0, 0]         # 1/temperature, folded on the host
    # (B, E, E) pairwise dots over H via VPU broadcast-multiply + lane reduce
    # (avoids padding tiny E x H operands to full MXU tiles).
    sims = jnp.sum(s3[:, :, None, :] * s3[:, None, :, :], axis=-1) * inv_temp

    importance = jnp.sum(sims, axis=2) * (1.0 / E)                # (B, E)
    probs = jax.nn.sigmoid(importance)
    # exact division (only B*E elements, off the critical path)
    probs = probs / (jnp.sum(probs, axis=-1, keepdims=True) + 1e-9)

    # ---- top-k (k=2), torch.topk-style first-occurrence tie breaking --------
    iota = lax.broadcasted_iota(jnp.int32, probs.shape, 1)        # (B, E)

    def top1(p):
        m = jnp.max(p, axis=-1, keepdims=True)                    # (B, 1)
        i = jnp.min(jnp.where(p == m, iota, E), axis=-1, keepdims=True)
        return m, i

    w1, i1 = top1(probs)
    w2, i2 = top1(jnp.where(iota == i1, -jnp.inf, probs))

    wsum = w1 + w2
    w1n = w1 / wsum                       # exact division (B*K elements)
    w2n = w2 / wsum

    # ---- weighted combine: scatter the renormalized top-k weights back onto
    # the expert axis and do a dense sublane reduction (no gather needed).
    sel = jnp.where(iota == i1, w1n, 0.0) + jnp.where(iota == i2, w2n, 0.0)
    combined = jnp.sum(sel[:, :, None] * s3, axis=1)              # (B, H)

    # ---- single lane-dense output slab ---------------------------------------
    pieces = rows                                                  # E*H
    pieces.append(combined)                                        # H
    pieces += [sims[:, e, :] for e in range(E)]                    # E*E
    pieces.append(probs)                                           # E
    pieces.append(jnp.concatenate([w1n, w2n], axis=-1))            # K
    pieces.append(jnp.concatenate([i1, i2], axis=-1).astype(jnp.float32))  # K
    pieces.append(jnp.zeros((B, _PAD), jnp.float32))               # pad
    out_ref[...] = jnp.concatenate(pieces, axis=-1)                # (B, 256)


# ----------------------------------------------------------------------------
# Host-side parameter prepacking (done once): block-diagonal projector weights.
# ----------------------------------------------------------------------------
def pack_projector_weights(proj_weights):
    # proj_weights: (E, H, D), torch Linear (out_features, in_features) layout.
    # Result: (E*D, E*H) with block e = proj_weights[e].T so the kernel does a
    # plain NN dot: (B, E*D) @ (E*D, E*H) -> (B, E*H).
    w_blk = jnp.zeros((E * D, E * H), jnp.float32)
    for e in range(E):
        w_blk = w_blk.at[e * D:(e + 1) * D, e * H:(e + 1) * H].set(
            proj_weights[e].T)
    return w_blk


# ----------------------------------------------------------------------------
# Wrapper: one pallas_call, one lane-dense output, split back in XLA land.
# ----------------------------------------------------------------------------
def text_encoder_forward(expert_feats, w_blk, inv_temp):
    # TODO(synk): the frozen pretrained text backbones + tokenizers are not
    # translatable; expert_feats stands in for their pooled outputs.
    # Pack per-expert features into one lane-dense (B, E*D) tile.
    feats_packed = jnp.transpose(expert_feats, (1, 0, 2)).reshape(B, E * D)

    vmem = pl.BlockSpec(memory_space=pltpu.MemorySpace.VMEM)
    smem = pl.BlockSpec(memory_space=pltpu.MemorySpace.SMEM)

    slab = pl.pallas_call(
        _text_encoder_kernel,
        out_shape=jax.ShapeDtypeStruct((B, SLAB_W), jnp.float32),
        in_specs=[smem, vmem, vmem],
        out_specs=vmem,
    )(inv_temp, feats_packed, w_blk)

    stacked = slab[:, _OFF_STACKED:_OFF_STACKED + E * H].reshape(B, E, H)
    combined = slab[:, _OFF_COMBINED:_OFF_COMBINED + H]
    sims = slab[:, _OFF_SIMS:_OFF_SIMS + E * E].reshape(B, E, E)
    probs = slab[:, _OFF_PROBS:_OFF_PROBS + E]
    topw = slab[:, _OFF_TOPW:_OFF_TOPW + K]
    idx = slab[:, _OFF_IDX:_OFF_IDX + K].astype(jnp.int32)

    aux = {
        "routing_probs": probs,
        "selected_experts": idx,
        "expert_weights": topw,
        "similarities": sims,
        # (B, E, H) stacked array returned directly; consumers index
        # stacked[:, e, :] instead of a Python list of E slice ops.
        "expert_features": stacked,
    }
    return combined, aux


# ----------------------------------------------------------------------------
# Pure-JAX reference (for a quick correctness check).
# ----------------------------------------------------------------------------
def _reference(expert_feats, proj_weights, temperature):
    feats = []
    for e in range(E):
        y = expert_feats[e] @ proj_weights[e].T
        y = y / jnp.maximum(jnp.linalg.norm(y, axis=-1, keepdims=True), 1e-12)
        feats.append(y)
    stacked = jnp.stack(feats, axis=1)                            # (B, E, H)
    sims = jnp.einsum('beh,bfh->bef', stacked, stacked) / temperature[0]
    probs = jax.nn.sigmoid(sims.mean(axis=2))
    probs = probs / (probs.sum(axis=-1, keepdims=True) + 1e-9)
    w, i = lax.top_k(probs, K)
    w = w / w.sum(axis=-1, keepdims=True)
    combined = jnp.einsum('bk,bkh->bh', w, jnp.take_along_axis(
        stacked, i[:, :, None], axis=1))
    return combined, probs, sims, stacked, i, w


if __name__ == "__main__":
    key = jax.random.PRNGKey(0)
    k_feat, k_w, _ = jax.random.split(key, 3)

    # synthetic expert backbone outputs (stand-in for pooled transformer features)
    expert_feats = jax.random.normal(k_feat, (E, B, D), dtype=jnp.float32)
    # deterministic projector weights, torch Linear layout (out_features, in_features)
    proj_weights = jax.random.normal(k_w, (E, H, D), dtype=jnp.float32) / jnp.sqrt(D)
    # nn.Parameter(torch.ones(1) * 0.1)
    temperature = jnp.full((1,), 0.1, dtype=jnp.float32)

    # one-time host-side prepacking of parameters
    w_blk = pack_projector_weights(proj_weights)
    inv_temp = (1.0 / temperature).reshape(1, 1).astype(jnp.float32)

    combined, aux = text_encoder_forward(expert_feats, w_blk, inv_temp)
    jax.block_until_ready(combined)
    jax.block_until_ready(aux["routing_probs"])

    ref_combined, ref_probs, ref_sims, ref_stacked, ref_idx, ref_w = _reference(
        expert_feats, proj_weights, temperature)
    assert jnp.allclose(combined, ref_combined, atol=2e-3, rtol=2e-3)
    assert jnp.allclose(aux["routing_probs"], ref_probs, atol=2e-3, rtol=2e-3)
    assert jnp.allclose(aux["similarities"], ref_sims, atol=2e-3, rtol=2e-3)
    assert jnp.allclose(aux["expert_features"], ref_stacked, atol=2e-3, rtol=2e-3)
    assert jnp.array_equal(aux["selected_experts"], ref_idx)
    assert jnp.allclose(aux["expert_weights"], ref_w, atol=2e-3, rtol=2e-3)

    print("KERNEL_OK")
</pallas_src>

<mosaic_0001>
module attributes {stable_mosaic.version = 11 : i64} {
  func.func @_text_encoder_kernel(%arg0: memref<1x1xf32, #tpu.memory_space<smem>>, %arg1: memref<2x128xf32, #tpu.memory_space<vmem>>, %arg2: memref<128x128xf32, #tpu.memory_space<vmem>>, %arg3: memref<2x256xf32, #tpu.memory_space<vmem>>) attributes {dimension_semantics = [], scalar_prefetch = 0 : i64, scratch_operands = 0 : i64, tpu.core_type = #tpu.core_type<tc>} {
    %c0 = arith.constant 0 : index
    %c0_0 = arith.constant 0 : index
    %0 = vector.load %arg1[%c0, %c0_0] : memref<2x128xf32, #tpu.memory_space<vmem>>, vector<2x128xf32>
    %c0_1 = arith.constant 0 : index
    %c0_2 = arith.constant 0 : index
    %1 = vector.load %arg2[%c0_1, %c0_2] : memref<128x128xf32, #tpu.memory_space<vmem>>, vector<128x128xf32>
    %cst = arith.constant dense<0.000000e+00> : vector<2x128xf32>
    %2 = tpu.matmul %0, %1, %cst {dimension_numbers = #tpu.dot_dimension_numbers<[1], [0], [0], [1], [0, 0, 1, 1], [], []>} : vector<2x128xf32>, vector<128x128xf32>, vector<2x128xf32> -> vector<2x128xf32>
    %3 = vector.extract_strided_slice %2 {offsets = [0, 0], sizes = [2, 32], strides = [1, 1]} : vector<2x128xf32> to vector<2x32xf32>
    %4 = arith.mulf %3, %3 : vector<2x32xf32>
    %cst_3 = arith.constant dense<0.000000e+00> : vector<2xf32>
    %5 = vector.multi_reduction <add>, %4, %cst_3 [1] : vector<2x32xf32> to vector<2xf32>
    %6 = vector.shape_cast %5 : vector<2xf32> to vector<2x1xf32>
    %cst_4 = arith.constant 1.000000e-24 : f32
    %7 = vector.broadcast %cst_4 : f32 to vector<2x1xf32>
    %8 = arith.maximumf %6, %7 : vector<2x1xf32>
    %9 = math.rsqrt %8 : vector<2x1xf32>
    %10 = vector.broadcast %9 : vector<2x1xf32> to vector<2x32xf32>
    %11 = arith.mulf %3, %10 : vector<2x32xf32>
    %12 = vector.extract_strided_slice %2 {offsets = [0, 32], sizes = [2, 32], strides = [1, 1]} : vector<2x128xf32> to vector<2x32xf32>
    %13 = arith.mulf %12, %12 : vector<2x32xf32>
    %cst_5 = arith.constant dense<0.000000e+00> : vector<2xf32>
    %14 = vector.multi_reduction <add>, %13, %cst_5 [1] : vector<2x32xf32> to vector<2xf32>
    %15 = vector.shape_cast %14 : vector<2xf32> to vector<2x1xf32>
    %cst_6 = arith.constant 1.000000e-24 : f32
    %16 = vector.broadcast %cst_6 : f32 to vector<2x1xf32>
    %17 = arith.maximumf %15, %16 : vector<2x1xf32>
    %18 = math.rsqrt %17 : vector<2x1xf32>
    %19 = vector.broadcast %18 : vector<2x1xf32> to vector<2x32xf32>
    %20 = arith.mulf %12, %19 : vector<2x32xf32>
    %21 = vector.extract_strided_slice %2 {offsets = [0, 64], sizes = [2, 32], strides = [1, 1]} : vector<2x128xf32> to vector<2x32xf32>
    %22 = arith.mulf %21, %21 : vector<2x32xf32>
    %cst_7 = arith.constant dense<0.000000e+00> : vector<2xf32>
    %23 = vector.multi_reduction <add>, %22, %cst_7 [1] : vector<2x32xf32> to vector<2xf32>
    %24 = vector.shape_cast %23 : vector<2xf32> to vector<2x1xf32>
    %cst_8 = arith.constant 1.000000e-24 : f32
    %25 = vector.broadcast %cst_8 : f32 to vector<2x1xf32>
    %26 = arith.maximumf %24, %25 : vector<2x1xf32>
    %27 = math.rsqrt %26 : vector<2x1xf32>
    %28 = vector.broadcast %27 : vector<2x1xf32> to vector<2x32xf32>
    %29 = arith.mulf %21, %28 : vector<2x32xf32>
    %30 = vector.extract_strided_slice %2 {offsets = [0, 96], sizes = [2, 32], strides = [1, 1]} : vector<2x128xf32> to vector<2x32xf32>
    %31 = arith.mulf %30, %30 : vector<2x32xf32>
    %cst_9 = arith.constant dense<0.000000e+00> : vector<2xf32>
    %32 = vector.multi_reduction <add>, %31, %cst_9 [1] : vector<2x32xf32> to vector<2xf32>
    %33 = vector.shape_cast %32 : vector<2xf32> to vector<2x1xf32>
    %cst_10 = arith.constant 1.000000e-24 : f32
    %34 = vector.broadcast %cst_10 : f32 to vector<2x1xf32>
    %35 = arith.maximumf %33, %34 : vector<2x1xf32>
    %36 = math.rsqrt %35 : vector<2x1xf32>
    %37 = vector.broadcast %36 : vector<2x1xf32> to vector<2x32xf32>
    %38 = arith.mulf %30, %37 : vector<2x32xf32>
    %39 = vector.shape_cast %11 : vector<2x32xf32> to vector<2x1x32xf32>
    %40 = vector.shape_cast %20 : vector<2x32xf32> to vector<2x1x32xf32>
    %41 = vector.shape_cast %29 : vector<2x32xf32> to vector<2x1x32xf32>
    %42 = vector.shape_cast %38 : vector<2x32xf32> to vector<2x1x32xf32>
    %43 = tpu.concatenate %39, %40, %41, %42 in 1 : vector<2x1x32xf32>, vector<2x1x32xf32>, vector<2x1x32xf32>, vector<2x1x32xf32> -> vector<2x4x32xf32>
    %c0_11 = arith.constant 0 : index
    %c0_12 = arith.constant 0 : index
    %44 = memref.load %arg0[%c0_11, %c0_12] : memref<1x1xf32, #tpu.memory_space<smem>>
    %45 = vector.shape_cast %43 : vector<2x4x32xf32> to vector<2x4x1x32xf32>
    %46 = vector.shape_cast %43 : vector<2x4x32xf32> to vector<2x1x4x32xf32>
    %47 = vector.broadcast %45 : vector<2x4x1x32xf32> to vector<2x4x4x32xf32>
    %48 = vector.broadcast %46 : vector<2x1x4x32xf32> to vector<2x4x4x32xf32>
    %49 = arith.mulf %47, %48 : vector<2x4x4x32xf32>
    %cst_13 = arith.constant dense<0.000000e+00> : vector<2x4x4xf32>
    %50 = vector.multi_reduction <add>, %49, %cst_13 [3] : vector<2x4x4x32xf32> to vector<2x4x4xf32>
    %51 = vector.broadcast %44 : f32 to vector<2x4x4xf32>
    %52 = arith.mulf %50, %51 : vector<2x4x4xf32>
    %cst_14 = arith.constant dense<0.000000e+00> : vector<2x4xf32>
    %53 = vector.multi_reduction <add>, %52, %cst_14 [2] : vector<2x4x4xf32> to vector<2x4xf32>
    %cst_15 = arith.constant 2.500000e-01 : f32
    %54 = vector.broadcast %cst_15 : f32 to vector<2x4xf32>
    %55 = arith.mulf %53, %54 : vector<2x4xf32>
    %56 = arith.negf %55 : vector<2x4xf32>
    %57 = math.exp %56 : vector<2x4xf32>
    %cst_16 = arith.constant 1.000000e+00 : f32
    %58 = vector.broadcast %cst_16 : f32 to vector<2x4xf32>
    %59 = arith.addf %58, %57 : vector<2x4xf32>
    %60 = arith.divf %58, %59 : vector<2x4xf32>
    %cst_17 = arith.constant dense<0.000000e+00> : vector<2xf32>
    %61 = vector.multi_reduction <add>, %60, %cst_17 [1] : vector<2x4xf32> to vector<2xf32>
    %62 = vector.shape_cast %61 : vector<2xf32> to vector<2x1xf32>
    %cst_18 = arith.constant 9.99999971E-10 : f32
    %63 = vector.broadcast %cst_18 : f32 to vector<2x1xf32>
    %64 = arith.addf %62, %63 : vector<2x1xf32>
    %65 = vector.broadcast %64 : vector<2x1xf32> to vector<2x4xf32>
    %66 = arith.divf %60, %65 : vector<2x4xf32>
    %67 = tpu.iota {dimensions = array<i32: 1>} : vector<2x4xi32>
    %cst_19 = arith.constant dense<0xFF800000> : vector<2xf32>
    %68 = vector.multi_reduction <maximumf>, %66, %cst_19 [1] : vector<2x4xf32> to vector<2xf32>
    %69 = vector.shape_cast %68 : vector<2xf32> to vector<2x1xf32>
    %70 = vector.broadcast %69 : vector<2x1xf32> to vector<2x4xf32>
    %71 = arith.cmpf oeq, %66, %70 : vector<2x4xf32>
    %c4_i32 = arith.constant 4 : i32
    %72 = vector.broadcast %c4_i32 : i32 to vector<2x4xi32>
    %73 = arith.select %71, %67, %72 : vector<2x4xi1>, vector<2x4xi32>
    %cst_20 = arith.constant dense<2147483647> : vector<2xi32>
    %74 = vector.multi_reduction <minsi>, %73, %cst_20 [1] : vector<2x4xi32> to vector<2xi32>
    %75 = vector.shape_cast %74 : vector<2xi32> to vector<2x1xi32>
    %76 = vector.broadcast %75 : vector<2x1xi32> to vector<2x4xi32>
    %77 = arith.cmpi eq, %67, %76 : vector<2x4xi32>
    %cst_21 = arith.constant 0xFF800000 : f32
    %78 = vector.broadcast %cst_21 : f32 to vector<2x4xf32>
    %79 = arith.select %77, %78, %66 : vector<2x4xi1>, vector<2x4xf32>
    %cst_22 = arith.constant dense<0xFF800000> : vector<2xf32>
    %80 = vector.multi_reduction <maximumf>, %79, %cst_22 [1] : vector<2x4xf32> to vector<2xf32>
    %81 = vector.shape_cast %80 : vector<2xf32> to vector<2x1xf32>
    %82 = vector.broadcast %81 : vector<2x1xf32> to vector<2x4xf32>
    %83 = arith.cmpf oeq, %79, %82 : vector<2x4xf32>
    %c4_i32_23 = arith.constant 4 : i32
    %84 = vector.broadcast %c4_i32_23 : i32 to vector<2x4xi32>
    %85 = arith.select %83, %67, %84 : vector<2x4xi1>, vector<2x4xi32>
    %cst_24 = arith.constant dense<2147483647> : vector<2xi32>
    %86 = vector.multi_reduction <minsi>, %85, %cst_24 [1] : vector<2x4xi32> to vector<2xi32>
    %87 = vector.shape_cast %86 : vector<2xi32> to vector<2x1xi32>
    %88 = arith.addf %69, %81 : vector<2x1xf32>
    %89 = arith.divf %69, %88 : vector<2x1xf32>
    %90 = arith.divf %81, %88 : vector<2x1xf32>
    %91 = vector.broadcast %75 : vector<2x1xi32> to vector<2x4xi32>
    %92 = arith.cmpi eq, %67, %91 : vector<2x4xi32>
    %cst_25 = arith.constant 0.000000e+00 : f32
    %93 = vector.shape_cast %89 : vector<2x1xf32> to vector<2x1xf32>
    %94 = vector.broadcast %93 : vector<2x1xf32> to vector<2x4xf32>
    %95 = vector.broadcast %cst_25 : f32 to vector<2x4xf32>
    %96 = arith.select %92, %94, %95 : vector<2x4xi1>, vector<2x4xf32>
    %97 = vector.broadcast %87 : vector<2x1xi32> to vector<2x4xi32>
    %98 = arith.cmpi eq, %67, %97 : vector<2x4xi32>
    %cst_26 = arith.constant 0.000000e+00 : f32
    %99 = vector.shape_cast %90 : vector<2x1xf32> to vector<2x1xf32>
    %100 = vector.broadcast %99 : vector<2x1xf32> to vector<2x4xf32>
    %101 = vector.broadcast %cst_26 : f32 to vector<2x4xf32>
    %102 = arith.select %98, %100, %101 : vector<2x4xi1>, vector<2x4xf32>
    %103 = arith.addf %96, %102 : vector<2x4xf32>
    %104 = vector.shape_cast %103 : vector<2x4xf32> to vector<2x4x1xf32>
    %105 = vector.broadcast %104 : vector<2x4x1xf32> to vector<2x4x32xf32>
    %106 = arith.mulf %105, %43 : vector<2x4x32xf32>
    %cst_27 = arith.constant dense<0.000000e+00> : vector<2x32xf32>
    %107 = vector.multi_reduction <add>, %106, %cst_27 [1] : vector<2x4x32xf32> to vector<2x32xf32>
    %108 = vector.extract_strided_slice %52 {offsets = [0, 0, 0], sizes = [2, 1, 4], strides = [1, 1, 1]} : vector<2x4x4xf32> to vector<2x1x4xf32>
    %109 = vector.shape_cast %108 : vector<2x1x4xf32> to vector<2x4xf32>
    %110 = vector.extract_strided_slice %52 {offsets = [0, 1, 0], sizes = [2, 1, 4], strides = [1, 1, 1]} : vector<2x4x4xf32> to vector<2x1x4xf32>
    %111 = vector.shape_cast %110 : vector<2x1x4xf32> to vector<2x4xf32>
    %112 = vector.extract_strided_slice %52 {offsets = [0, 2, 0], sizes = [2, 1, 4], strides = [1, 1, 1]} : vector<2x4x4xf32> to vector<2x1x4xf32>
    %113 = vector.shape_cast %112 : vector<2x1x4xf32> to vector<2x4xf32>
    %114 = vector.extract_strided_slice %52 {offsets = [0, 3, 0], sizes = [2, 1, 4], strides = [1, 1, 1]} : vector<2x4x4xf32> to vector<2x1x4xf32>
    %115 = vector.shape_cast %114 : vector<2x1x4xf32> to vector<2x4xf32>
    %116 = tpu.concatenate %89, %90 in 1 : vector<2x1xf32>, vector<2x1xf32> -> vector<2x2xf32>
    %117 = tpu.concatenate %75, %87 in 1 : vector<2x1xi32>, vector<2x1xi32> -> vector<2x2xi32>
    %118 = arith.sitofp %117 : vector<2x2xi32> to vector<2x2xf32>
    %cst_28 = arith.constant 0.000000e+00 : f32
    %119 = vector.broadcast %cst_28 : f32 to vector<2x72xf32>
    %120 = tpu.concatenate %11, %20, %29, %38, %107, %109, %111, %113, %115, %66, %116, %118, %119 in 1 : vector<2x32xf32>, vector<2x32xf32>, vector<2x32xf32>, vector<2x32xf32>, vector<2x32xf32>, vector<2x4xf32>, vector<2x4xf32>, vector<2x4xf32>, vector<2x4xf32>, vector<2x4xf32>, vector<2x2xf32>, vector<2x2xf32>, vector<2x72xf32> -> vector<2x256xf32>
    %c0_29 = arith.constant 0 : index
    %c0_30 = arith.constant 0 : index
    %121 = vector.load %arg3[%c0_29, %c0_30] : memref<2x256xf32, #tpu.memory_space<vmem>>, vector<2x256xf32>
    tpu.vector_store %arg3[%c0_29, %c0_30], %120 {strides = array<i32>} : memref<2x256xf32, #tpu.memory_space<vmem>>, vector<2x256xf32>,
    return
  }
}

</mosaic_0001>

<bundles_post_ra>
// kernel: tpu_custom_call.1
= control target key start
LH: loop header
LB: loop body
LE: loop exit
PB: predicated region body
PF: predicated region fallthrough
CT: control target
= control target key end

     0   :  { %9 = vsyncpa [#allocation4], 0  ;;  %s1133_s0 = inlined_call_operand.<no memory space> [shape: f32[1,1], index: 0, kind: input, shape index: {}]   ;;  %s1134_s1 = inlined_call_operand.vmem [shape: f32[2,128], index: 1, kind: input, shape index: {}]   ;;  %s1135_s2 = inlined_call_operand.hbm [shape: f32[128,128], index: 2, kind: input, shape index: {}]   ;;  %s1136_s3 = inlined_call_operand.hbm [shape: f32[2,256], index: 3, kind: output, shape index: {}]  }
   0x1   :  { %10 = vsyncpa [#allocation5], 0  ;;  %s921_s12 = smov [#allocation3]  }
   0x2   :  { %s20_s13 = sshll.u32 %s921_s12, 4  ;;  %s21_s13 = int_to_ptr.vmem [resolvable:$true] %s20_s13 }
   0x3   :  { %s885_s14 = scalar_lea.vmem %s21_s13, 2048  ;;  %p890_p1 = scmp.lt.s32.totalorder %s21_s13, %s21_s13 }
   0x4   :  { %p886_p0 = scmp.ne.s32.totalorder %s21_s13, %s885_s14  ;;  %p891_p2 = scmp.lt.s32.totalorder %s885_s14, %s885_s14 }
   0x6   :  { %p892_p3 = por %p891_p2, %p890_p1 }
   0x8   :  { %p893_p4 = pnand %p892_p3, %p886_p0 }
   0xa   :  { %896 = shalt.err (!%p893_p4)
}
   0xb   :  { %s922_s15 = smov 128   ;;  %s923_s16 = smov 8  }
   0xc   :  { %26 = dma.hbm_to_vmem [thread:$0]  %s1135_s2, 2048, %s21_s13, [#allocation4], %s922_s15, %s922_s15, %s923_s16  }
   0xd   :  { %917 = dma.done.wait [#allocation4], 2048  }
   0xe   :  { %918 = vsyncadd [#allocation4], 4294965248  ;;  %v924_v0 = vmov 0.0   ;;  %vm925_vm0 = vmmov 0   ;;  %v46_v1 = vld [vmem:[#allocation3 + $0x78] sm:$0xff]  ;;  %v45_v2 = vld [vmem:[#allocation3 + $0x70] sm:$0xff]  ;;  %v157_v36 = vlaneseq }
   0xf   :  { %805 = vmatprep.subr.mxu0 %v924_v0  ;;  %837 = vmatprep.mubr.msk.f32.mxu0 %vm925_vm0, %v924_v0  ;;  %v44_v3 = vld [vmem:[#allocation3 + $0x68] sm:$0xff]  ;;  %v43_v4 = vld [vmem:[#allocation3 + $0x60] sm:$0xff]  ;;  %v42_v5 = vld [vmem:[#allocation3 + $0x58] sm:$0xff]  ;;  %s926_s20 = smov 32   ;;  %s927_s21 = smov 96   ;;  %vm118_vm1 = vcmask 254976  }
  0x10   :  { %806 = vmatpush3.msra.mxu0 %v46_v1  ;;  %v41_v6 = vld [vmem:[#allocation3 + $0x50] sm:$0xff]  ;;  %v40_v7 = vld [vmem:[#allocation3 + $0x48] sm:$0xff]  ;;  %v39_v8 = vld [vmem:[#allocation3 + $0x40] sm:$0xff]  ;;  %s928_s22 = smov 64   ;;  %v929_v34 = vmov 1966171168  }
  0x11   :  { %807 = vmatprep.subr.mxu0 %v924_v0  ;;  %v38_v9 = vld [vmem:[#allocation3 + $0x38] sm:$0xff]  ;;  %v37_v10 = vld [vmem:[#allocation3 + $0x30] sm:$0xff]  ;;  %v36_v11 = vld [vmem:[#allocation3 + $0x28] sm:$0xff]  ;;  %v155_v35 = vunpack.c.l.s4 %v929_v34  ;;  %v964_v40 = vshrl.u32 %v157_v36, 7  ;;  %vm737_vm2 = vcmask 261120   ;;  %vm739_vm3 = vcmask 523264  }
  0x12   :  { %808 = vmatpush3.msra.mxu0 %v45_v2  ;;  %v35_v12 = vld [vmem:[#allocation3 + $0x20] sm:$0xff]  ;;  %v34_v13 = vld [vmem:[#allocation3 + $0x18] sm:$0xff]  ;;  %v33_v14 = vld [vmem:[#allocation3 + $0x10] sm:$0xff]  ;;  %vm741_vm4 = vcmask 785408   ;;  %vm289_vm5 = vcmask 1040384   ;;  %vm295_vm6 = vcmask 1042432  }
  0x13   :  { %809 = vmatprep.subr.mxu0 %v924_v0  ;;  %v32_v15 = vld [vmem:[#allocation3 + $0x8] sm:$0xff]  ;;  %v31_v16 = vld [vmem:[#allocation3] sm:$0xff]  ;;  %v156_v39 = vunpack.c.0.s8 %v155_v35  ;;  %v971_v45 = vsub.s32 0, %v964_v40  ;;  %vm292_vm7 = vcmask 1041408   ;;  %vm397_vm8 = vcmask 257024   ;;  %s932_s24 = smov 52  }
  0x14   :  { %810 = vmatpush3.msra.mxu0 %v44_v3  ;;  %v30_v17 = vld [vmem:[%s1134_s1] sm:$0x3]  ;;  %vm473_vm9 = vcmask 1041409   ;;  %vm475_vm10 = vcmask 1042434   ;;  %vm477_vm11 = vcmask 1043459   ;;  %vm484_vm12 = vcmask 27648  }
  0x15   :  { %811 = vmatprep.subr.mxu0 %v924_v0  ;;  %v967_v41 = vsub.s32 %v156_v39, %v964_v40  ;;  %vm517_vm13 = vcmask 25600   ;;  %s933_s25 = smov [#allocation6]  }
  0x16   :  { %812 = vmatpush3.msra.mxu0 %v43_v4  ;;  %s776_s26 = sshll.u32 %s933_s25, 4  ;;  %s777_s26 = int_to_ptr.vmem [resolvable:$true] %s776_s26 }
  0x17   :  { %813 = vmatprep.subr.mxu0 %v924_v0  ;;  %s897_s27 = scalar_lea.vmem %s777_s26, 64  ;;  %p902_p6 = scmp.lt.s32.totalorder %s777_s26, %s777_s26 }
  0x18   :  { %814 = vmatpush3.msra.mxu0 %v42_v5  ;;  %p898_p5 = scmp.ne.s32.totalorder %s777_s26, %s897_s27  ;;  %p903_p7 = scmp.lt.s32.totalorder %s897_s27, %s897_s27 }
  0x19   :  { %815 = vmatprep.subr.mxu0 %v924_v0 }
  0x1a   :  { %816 = vmatpush3.msra.mxu0 %v41_v6  ;;  %p904_p8 = por %p903_p7, %p902_p6 }
  0x1b   :  { %817 = vmatprep.subr.mxu0 %v924_v0 }
  0x1c   :  { %818 = vmatpush3.msra.mxu0 %v40_v7  ;;  %p905_p9 = pnand %p904_p8, %p898_p5 }
  0x1d   :  { %819 = vmatprep.subr.mxu0 %v924_v0 }
  0x1e   :  { %820 = vmatpush3.msra.mxu0 %v39_v8 }
  0x1f   :  { %821 = vmatprep.subr.mxu0 %v924_v0 }
  0x20   :  { %822 = vmatpush3.msra.mxu0 %v38_v9 }
  0x21   :  { %823 = vmatprep.subr.mxu0 %v924_v0 }
  0x22   :  { %824 = vmatpush3.msra.mxu0 %v37_v10 }
  0x23   :  { %825 = vmatprep.subr.mxu0 %v924_v0 }
  0x24   :  { %826 = vmatpush3.msra.mxu0 %v36_v11 }
  0x25   :  { %827 = vmatprep.subr.mxu0 %v924_v0 }
  0x26   :  { %828 = vmatpush3.msra.mxu0 %v35_v12 }
  0x27   :  { %829 = vmatprep.subr.mxu0 %v924_v0 }
  0x28   :  { %830 = vmatpush3.msra.mxu0 %v34_v13 }
  0x29   :  { %831 = vmatprep.subr.mxu0 %v924_v0 }
  0x2a   :  { %832 = vmatpush3.msra.mxu0 %v33_v14 }
  0x2b   :  { %833 = vmatprep.subr.mxu0 %v924_v0 }
  0x2c   :  { %834 = vmatpush3.msra.mxu0 %v32_v15 }
  0x2d   :  { %835 = vmatprep.subr.mxu0 %v924_v0 }
  0x2e   :  { %836 = vmatpush3.msra.mxu0 %v31_v16 }
  0x2f   :  { %838 = vmatmul.mubr.f32.vlgmr.msra.gmra.mxu0 %v30_v17 }
  0xef   :  { %v113_v18 = vpop.f32.mrf.mxu0 }
  0xf0   :  { %v117_v19 = vmul.f32 %v113_v18, %v113_v18 }
  0xf1   :  { %v839_v20 = vpop.f32.mrf.mxu0 }
  0xf2   :  { %144 = vrot.lane.b32.xlu1 %v117_v19, %s926_s20  ;;  %126 = vrot.lane.b32.xlu0 %v117_v19, %s927_s21  ;;  %v119_v25 = vsel %vm118_vm1, %v117_v19, 0.0 }
  0xf6   :  { %135 = vrot.lane.b32.xlu0 %v117_v19, %s928_s22 }
 0x164   :  { %v127_v21 = vpop.permute.xlu0 %126  ;;  %v145_v26 = vpop.permute.xlu1 %144 }
 0x165   :  { %v129_v22 = vsel %vm118_vm1, %v127_v21, 0.0  ;;  %v147_v27 = vsel %vm118_vm1, %v145_v26, 0.0 }
 0x166   :  { %130 = vadd.xlane.f32.xlu1 %v129_v22 }
 0x168   :  { %v136_v23 = vpop.permute.xlu0 %135 }
 0x169   :  { %v138_v24 = vsel %vm118_vm1, %v136_v23, 0.0 }
 0x16a   :  { %139 = vadd.xlane.f32.xlu0 %v138_v24  ;;  %120 = vadd.xlane.f32.xlu1 %v119_v25 }
 0x16e   :  { %148 = vadd.xlane.f32.xlu0 %v147_v27 }
 0x1ef   :  { %v131_v28 = vpop.xlane.xlu1 %130 }
 0x1f0   :  { %v132_v29 = vmax.f32 %v131_v28, 1e-24 }
 0x1f2   :  { %855 = vrsqrt.f32 %v132_v29 }
 0x1f3   :  { %v140_v30 = vpop.xlane.xlu0 %139  ;;  %v121_v31 = vpop.xlane.xlu1 %120 }
 0x1f4   :  { %v141_v32 = vmax.f32 %v140_v30, 1e-24  ;;  %v122_v33 = vmax.f32 %v121_v31, 1e-24 }
 0x1f6   :  { %857 = vrsqrt.f32 %v141_v32 }
 0x1f7   :  { %859 = vrsqrt.f32 %v122_v33  ;;  %v149_v37 = vpop.xlane.xlu0 %148 }
 0x1f8   :  { %v150_v38 = vmax.f32 %v149_v37, 1e-24 }
 0x1fa   :  { %861 = vrsqrt.f32 %v150_v38 }
 0x1ff   :  { %v856_v42 = vpop.eup %855 }
 0x200   :  { %v134_v43 = vmul.f32 %v856_v42, %v113_v18 }
 0x202   :  { %v185_v44 = vrot.slane %v134_v43, %v967_v41 }
 0x203   :  { %v858_v46 = vpop.eup %857 }
 0x204   :  { %v860_v47 = vpop.eup %859  ;;  %v193_v48 = vrot.slane %v185_v44, %v967_v41  ;;  %v143_v49 = vmul.f32 %v858_v46, %v113_v18  ;;  %v186_v50 = vcombine.high %v185_v44, %v185_v44 }
 0x205   :  { %v124_v51 = vmul.f32 %v860_v47, %v113_v18 }
 0x206   :  { %v250_v52 = vrot.slane %v193_v48, %v971_v45  ;;  %v208_v53 = vrot.slane %v143_v49, %v967_v41  ;;  %v200_v59 = vrot.slane %v186_v50, %v967_v41 }
 0x207   :  { %v862_v54 = vpop.eup %861  ;;  %v738_v55 = vsel %vm737_vm2, %v124_v51, %v134_v43  ;;  %v160_v8 = vrot.slane %v124_v51, %v967_v41 }
 0x208   :  { %255 = vrot.lane.b32.xlu0 %v250_v52, %s927_s21  ;;  %v216_v56 = vrot.slane %v208_v53, %v967_v41  ;;  %v209_v57 = vcombine.high %v208_v53, %v208_v53  ;;  %v152_v58 = vmul.f32 %v862_v54, %v113_v18  ;;  %v740_v60 = vsel %vm739_vm3, %v738_v55, %v143_v49 }
 0x209   :  { %v254_v3 = vrot.slane %v200_v59, %v971_v45  ;;  %v161_v10 = vcombine.high %v160_v8, %v160_v8  ;;  %v168_v15 = vrot.slane %v160_v8, %v967_v41 }
 0x20a   :  { %v264_v61 = vrot.slane %v216_v56, %v971_v45  ;;  %v223_v62 = vrot.slane %v209_v57, %v967_v41  ;;  %v231_v63 = vrot.slane %v152_v58, %v967_v41  ;;  %v983_v0 = vsel %vm741_vm4, %v740_v60, %v152_v58 }
 0x20b   :  { %v175_v13 = vrot.slane %v161_v10, %v967_v41 }
 0x20c   :  { %269 = vrot.lane.b32.xlu1 %v264_v61, %s928_s22  ;;  %v268_v1 = vrot.slane %v223_v62, %v971_v45  ;;  %v232_v2 = vcombine.high %v231_v63, %v231_v63  ;;  %v239_v5 = vrot.slane %v231_v63, %v967_v41  ;;  %v1036_v63 = vand.u32 127, %v157_v36 }
 0x20e   :  { %271 = vrot.lane.b32.xlu0 %v268_v1, %s928_s22  ;;  %v246_v4 = vrot.slane %v232_v2, %v967_v41  ;;  %v278_v7 = vrot.slane %v239_v5, %v971_v45  ;;  %v685_v1 = vadd.s32 4294967260, %v1036_v63  ;;  %v674_v2 = vadd.s32 4294967264, %v1036_v63 }
 0x20f   :  { %v696_v36 = vadd.s32 4294967256, %v1036_v63 }
 0x210   :  { %257 = vrot.lane.b32.xlu1 %v254_v3, %s927_s21  ;;  %v282_v6 = vrot.slane %v246_v4, %v971_v45  ;;  %v422_v4 = vstv %s1133_s0  ;;  %v677_v8 = vsub.s32 %v674_v2, %v964_v40  ;;  %s931_s0 = smov 54  }
 0x212   :  { %285 = vrot.lane.b32.xlu0 %v282_v6, %s926_s20  ;;  %v688_v6 = vsub.s32 %v685_v1, %v964_v40 }
 0x214   :  { %283 = vrot.lane.b32.xlu1 %v278_v7, %s926_s20 }
 0x27a   :  { %v256_v9 = vpop.permute.xlu0 %255 }
 0x27b   :  { %v290_v19 = vsel %vm289_vm5, %v168_v15, %v256_v9 }
 0x27e   :  { %v270_v11 = vpop.permute.xlu1 %269 }
 0x27f   :  { %v293_v21 = vsel %vm292_vm7, %v290_v19, %v270_v11 }
 0x280   :  { %v272_v12 = vpop.permute.xlu0 %271 }
 0x282   :  { %v258_v14 = vpop.permute.xlu1 %257 }
 0x283   :  { %v291_v16 = vsel %vm289_vm5, %v175_v13, %v258_v14  ;;  %v1048_v13 = vsub.s32 %v1036_v63, %v964_v40 }
 0x284   :  { %v286_v17 = vpop.permute.xlu0 %285  ;;  %v294_v18 = vsel %vm292_vm7, %v291_v16, %v272_v12  ;;  %vm744_vm7 = vcmask 293888  }
 0x285   :  { %v999_v20 = vsel %vm295_vm6, %v294_v18, %v286_v17  ;;  %v699_v18 = vsub.s32 %v696_v36, %v964_v40 }
 0x286   :  { %v284_v22 = vpop.permute.xlu1 %283  ;;  %v331_v23 = vrot.slane %v999_v20, %v967_v41 }
 0x287   :  { %v1003_v24 = vsel %vm295_vm6, %v293_v21, %v284_v22  ;;  %v707_v21 = vadd.s32 4294967252, %v1036_v63  ;;  %vm666_vm6 = vcmask 7168  }
 0x288   :  { %v307_v25 = vrot.slane %v1003_v24, %v967_v41  ;;  %v332_v26 = vcombine.high %v331_v23, %v331_v23  ;;  %v339_v27 = vrot.slane %v331_v23, %v967_v41 }
 0x28a   :  { %v315_v28 = vrot.slane %v307_v25, %v967_v41  ;;  %v308_v29 = vcombine.high %v307_v25, %v307_v25  ;;  %v346_v30 = vrot.slane %v332_v26, %v967_v41  ;;  %v347_v31 = vcombine.high %v339_v27, %v339_v27 }
 0x28b   :  { %v368_v38 = vrot.slane %v339_v27, %v971_v45 }
 0x28c   :  { %v352_v32 = vrot.slane %v315_v28, %v971_v45  ;;  %v322_v33 = vrot.slane %v308_v29, %v967_v41  ;;  %v372_v34 = vrot.slane %v346_v30, %v971_v45  ;;  %v323_v39 = vcombine.high %v315_v28, %v315_v28 }
 0x28d   :  { %v376_v42 = vrot.slane %v347_v31, %v971_v45  ;;  %v348_v47 = vcombine.high %v346_v30, %v346_v30  ;;  %v393_v48 = vmul.f32 %v368_v38, %v999_v20 }
 0x28e   :  { %v389_v35 = vmul.f32 %v352_v32, %v1003_v24  ;;  %v356_v37 = vrot.slane %v322_v33, %v971_v45  ;;  %v394_v46 = vmul.f32 %v372_v34, %v999_v20  ;;  %v360_v49 = vrot.slane %v323_v39, %v971_v45 }
 0x28f   :  { %v324_v50 = vcombine.high %v322_v33, %v322_v33  ;;  %v395_v52 = vmul.f32 %v376_v42, %v999_v20  ;;  %v380_v53 = vrot.slane %v348_v47, %v971_v45  ;;  %v410_v54 = vsel %vm397_vm8, %v393_v48, 0.0 }
 0x290   :  { %v398_v43 = vsel %vm397_vm8, %v389_v35, 0.0  ;;  %v390_v44 = vmul.f32 %v356_v37, %v1003_v24  ;;  %v413_v51 = vsel %vm397_vm8, %v394_v46, 0.0  ;;  %v391_v55 = vmul.f32 %v360_v49, %v1003_v24 }
 0x291   :  { %399 = vadd.xlane.f32.xlu1 %v398_v43  ;;  %v364_v56 = vrot.slane %v324_v50, %v971_v45  ;;  %v416_v57 = vsel %vm397_vm8, %v395_v52, 0.0  ;;  %v396_v58 = vmul.f32 %v380_v53, %v999_v20  ;;  %v710_v33 = vsub.s32 %v707_v21, %v964_v40 }
 0x292   :  { %v401_v41 = vsel %vm397_vm8, %v390_v44, 0.0  ;;  %v404_v59 = vsel %vm397_vm8, %v391_v55, 0.0 }
 0x293   :  { %402 = vadd.xlane.f32.xlu0 %v401_v41  ;;  %v392_v60 = vmul.f32 %v364_v56, %v1003_v24  ;;  %v419_v61 = vsel %vm397_vm8, %v396_v58, 0.0 }
 0x295   :  { %414 = vadd.xlane.f32.xlu1 %v413_v51  ;;  %v407_v62 = vsel %vm397_vm8, %v392_v60, 0.0 }
 0x297   :  { %411 = vadd.xlane.f32.xlu0 %v410_v54 }
 0x299   :  { %417 = vadd.xlane.f32.xlu1 %v416_v57 }
 0x29b   :  { %405 = vadd.xlane.f32.xlu0 %v404_v59 }
 0x29d   :  { %420 = vadd.xlane.f32.xlu1 %v419_v61 }
 0x29f   :  { %408 = vadd.xlane.f32.xlu0 %v407_v62 }
 0x31a   :  { %v400_v3 = vpop.xlane.xlu1 %399 }
 0x31b   :  { %v423_v9 = vmul.f32 %v422_v4, %v400_v3 }
 0x31c   :  { %v403_v5 = vpop.xlane.xlu0 %402 }
 0x31d   :  { %v424_v7 = vmul.f32 %v422_v4, %v403_v5  ;;  %v678_v17 = vrot.slane %v423_v9, %v677_v8  ;;  %v444_v42 = vrot.slane %v423_v9, %v1048_v13 }
 0x31e   :  { %v415_v10 = vpop.xlane.xlu1 %414 }
 0x31f   :  { %v428_v11 = vmul.f32 %v422_v4, %v415_v10  ;;  %v689_v14 = vrot.slane %v424_v7, %v688_v6  ;;  %v448_v31 = vrot.slane %v424_v7, %v1048_v13 }
 0x320   :  { %v412_v12 = vpop.xlane.xlu0 %411 }
 0x321   :  { %v693_v15 = vrot.slane %v428_v11, %v688_v6  ;;  %v427_v16 = vmul.f32 %v422_v4, %v412_v12  ;;  %v464_v28 = vrot.slane %v428_v11, %v1048_v13  ;;  %v474_v49 = vsel %vm473_vm9, %v448_v31, %v444_v42 }
 0x322   :  { %v418_v19 = vpop.xlane.xlu1 %417  ;;  %v930_v12 = vmov 0  }
 0x323   :  { %v1053_v22 = vsel %vm473_vm9, %v693_v15, %v689_v14  ;;  %v460_v23 = vrot.slane %v427_v16, %v1048_v13  ;;  %v682_v25 = vrot.slane %v427_v16, %v677_v8  ;;  %v429_v26 = vmul.f32 %v422_v4, %v418_v19  ;;  %854 = vset.pattern.permute.xlu0 %v930_v12 }
 0x324   :  { %v406_v27 = vpop.xlane.xlu0 %405  ;;  %853 = vset.pattern.permute.xlu1 %v930_v12  ;;  %v1082_v14 = vsub.s32 1, %v964_v40 }
 0x325   :  { %v1058_v29 = vsel %vm473_vm9, %v682_v25, %v678_v17  ;;  %v425_v30 = vmul.f32 %v422_v4, %v406_v27  ;;  %v468_v32 = vrot.slane %v429_v26, %v1048_v13  ;;  %v704_v35 = vrot.slane %v429_v26, %v699_v18 }
 0x326   :  { %v421_v34 = vpop.xlane.xlu1 %420  ;;  %v479_v39 = vsel %vm473_vm9, %v464_v28, %v460_v23 }
 0x327   :  { %v700_v37 = vrot.slane %v425_v30, %v699_v18  ;;  %v430_v38 = vmul.f32 %v422_v4, %v421_v34  ;;  %v452_v43 = vrot.slane %v425_v30, %v1048_v13  ;;  %v480_v48 = vsel %vm475_vm10, %v468_v32, %v479_v39 }
 0x328   :  { %v409_v44 = vpop.xlane.xlu0 %408 }
 0x329   :  { %v1067_v46 = vsel %vm473_vm9, %v704_v35, %v700_v37  ;;  %v472_v47 = vrot.slane %v430_v38, %v1048_v13  ;;  %v426_v41 = vmul.f32 %v422_v4, %v409_v44  ;;  %v715_v50 = vrot.slane %v430_v38, %v710_v33 }
 0x32a   :  { %v476_v55 = vsel %vm475_vm10, %v452_v43, %v474_v49  ;;  %vm748_vm10 = vcmask 359424  }
 0x32b   :  { %v456_v51 = vrot.slane %v426_v41, %v1048_v13  ;;  %v711_v52 = vrot.slane %v426_v41, %v710_v33  ;;  %v481_v53 = vsel %vm477_vm11, %v472_v47, %v480_v48 }
 0x32c   :  { %v488_v54 = vsel %vm484_vm12, %v481_v53, 0.0 }
 0x32d   :  { %v1075_v56 = vsel %vm473_vm9, %v715_v50, %v711_v52  ;;  %489 = vadd.xlane.f32.xlu1 %v488_v54  ;;  %v478_v57 = vsel %vm477_vm11, %v456_v51, %v476_v55  ;;  %vm750_vm11 = vcmask 392192  }
 0x32e   :  { %v485_v58 = vsel %vm484_vm12, %v478_v57, 0.0  ;;  %vm752_vm12 = vcmask 424960  }
 0x32f   :  { %486 = vadd.xlane.f32.xlu0 %v485_v58 }
 0x3b6   :  { %v490_v59 = vpop.xlane.xlu1 %489 }
 0x3b7   :  { %v786_v60 = vmul.f32 -0.25, %v490_v59 }
 0x3b8   :  { %v487_v61 = vpop.xlane.xlu0 %486 }
 0x3b9   :  { %v497_v62 = vmul.f32 1.442695, %v786_v60  ;;  %v785_v1 = vmul.f32 -0.25, %v487_v61 }
 0x3bb   :  { %863 = vpow2.f32 %v497_v62  ;;  %v495_v2 = vmul.f32 1.442695, %v785_v1 }
 0x3bd   :  { %865 = vpow2.f32 %v495_v2 }
 0x3c8   :  { %v864_v3 = vpop.eup %863 }
 0x3c9   :  { %v500_v4 = vadd.f32 1.0, %v864_v3 }
 0x3ca   :  { %v866_v5 = vpop.eup %865 }
 0x3cb   :  { %867 = vrcp.f32 %v500_v4  ;;  %v499_v6 = vadd.f32 1.0, %v866_v5 }
 0x3cd   :  { %869 = vrcp.f32 %v499_v6 }
 0x3d8   :  { %v868_v7 = vpop.eup %867 }
 0x3d9   :  { %v514_v10 = vrot.slane %v868_v7, %v1048_v13 }
 0x3da   :  { %v870_v8 = vpop.eup %869 }
 0x3db   :  { %v510_v9 = vrot.slane %v870_v8, %v1048_v13 }
 0x3dd   :  { %v515_v36 = vsel %vm473_vm9, %v514_v10, %v510_v9 }
 0x3de   :  { %v518_v11 = vsel %vm517_vm13, %v515_v36, 0.0 }
 0x3df   :  { %519 = vadd.xlane.f32.xlu0 %v518_v11 }
 0x468   :  { %v520_v15 = vpop.xlane.xlu0 %519 }
 0x469   :  { %v521_v16 = vadd.f32 1e-09, %v520_v15 }
 0x46b   :  { %v526_v17 = vrot.slane %v521_v16, %v971_v45  ;;  %v530_v18 = vrot.slane %v521_v16, %v1082_v14 }
 0x46d   :  { %871 = vrcp.f32 %v526_v17 }
 0x46e   :  { %873 = vrcp.f32 %v530_v18 }
 0x47a   :  { %v872_v19 = vpop.eup %871 }
 0x47b   :  { %v874_v21 = vpop.eup %873  ;;  %v534_v23 = vmul.f32 %v872_v19, %v870_v8 }
 0x47c   :  { %v536_v25 = vmul.f32 %v874_v21, %v868_v7 }
 0x47d   :  { %540 = vperm.xlu1 %853, %v534_v23  }
 0x47e   :  { %543 = vperm.xlu0 %854, %v536_v25  }
 0x482   :  { %572 = vbcast.lane.b32.xlu0 %v1036_v63, 256 }
 0x4f8   :  { %v1087_v26 = vpop.permute.xlu1 %540 }
 0x4f9   :  { %v1089_v27 = vpop.permute.xlu0 %543  ;;  %v548_v28 = vrot.slane %v1087_v26, %v1048_v13 }
 0x4fa   :  { %v552_v30 = vrot.slane %v1089_v27, %v1048_v13 }
 0x4fc   :  { %v553_v31 = vsel %vm473_vm9, %v552_v30, %v548_v28 }
 0x4fd   :  { %v555_v32 = vsel %vm517_vm13, %v553_v31, -inf  ;;  %v573_v34 = vpop.permute.xlu0 %572 }
 0x4fe   :  { %556 = vmax.xlane.f32.xlu1 %v555_v32 }
 0x587   :  { %v557_v33 = vpop.xlane.xlu1 %556 }
 0x588   :  { %v566_v35 = vrot.slane %v557_v33, %v1082_v14  ;;  %v562_v37 = vrot.slane %v557_v33, %v971_v45 }
 0x58a   :  { %vm570_vm14 = vcmp.eq.f32.partialorder %v536_v25, %v566_v35  ;;  %vm569_vm15 = vcmp.eq.f32.partialorder %v534_v23, %v562_v37 }
 0x58b   :  { %v575_v38 = vsel %vm570_vm14, %v573_v34, 4  ;;  %v574_v39 = vsel %vm569_vm15, %v573_v34, 4  ;;  %vm756_vm14 = vcmask 457728  }
 0x58c   :  { %580 = vperm.xlu1 %853, %v575_v38   ;;  %577 = vperm.xlu0 %854, %v574_v39  }
 0x607   :  { %v581_v42 = vpop.permute.xlu1 %580  ;;  %v578_v43 = vpop.permute.xlu0 %577 }
 0x608   :  { %v589_v44 = vrot.slane %v581_v42, %v1048_v13  ;;  %v585_v47 = vrot.slane %v578_v43, %v1048_v13 }
 0x60a   :  { %v590_v41 = vsel %vm473_vm9, %v589_v44, %v585_v47  ;;  %v718_v44 = vadd.s32 4294967248, %v1036_v63 }
 0x60b   :  { %v591_v48 = vsel %vm517_vm13, %v590_v41, 2147483647 }
 0x60c   :  { %v593_v49 = vshra.s32 %v591_v48, 16  ;;  %v592_v51 = vand.u32 65535, %v591_v48 }
 0x60e   :  { %v595_v50 = vcvt.s32.f32 %v593_v49  ;;  %v594_v53 = vcvt.s32.f32 %v592_v51 }
 0x610   :  { %596 = vmin.xlane.f32.xlu0 %v595_v50 }
 0x699   :  { %v597_v52 = vpop.xlane.xlu0 %596 }
 0x69a   :  { %vm598_vm0 = vcmp.eq.f32.partialorder %v595_v50, %v597_v52  ;;  %v603_v55 = vcvt.f32.s32 %v597_v52  ;;  %v721_v50 = vsub.s32 %v718_v44, %v964_v40 }
 0x69b   :  { %v599_v54 = vsel %vm598_vm0, %v594_v53, inf }
 0x69c   :  { %600 = vmin.xlane.f32.xlu1 %v599_v54  ;;  %v604_v58 = vshll.u32 %v603_v55, 16  ;;  %v726_v53 = vrot.slane %v1089_v27, %v721_v50  ;;  %v722_v54 = vrot.slane %v1087_v26, %v721_v50 }
 0x725   :  { %v601_v57 = vpop.xlane.xlu1 %600 }
 0x726   :  { %v602_v59 = vcvt.f32.s32 %v601_v57 }
 0x728   :  { %v605_v60 = vadd.s32 %v604_v58, %v602_v59  ;;  %v727_v58 = vsel %vm473_vm9, %v726_v53, %v722_v54 }
 0x72a   :  { %vm606_vm1 = vcmp.eq.s32.totalorder %v1036_v63, %v605_v60 }
 0x72b   :  { %v607_v13 = vsel %vm606_vm1, -inf, %v553_v31 }
 0x72c   :  { %v608_v61 = vsel %vm517_vm13, %v607_v13, -inf }
 0x72d   :  { %609 = vmax.xlane.f32.xlu0 %v608_v61 }
 0x7b6   :  { %v610_v62 = vpop.xlane.xlu0 %609 }
 0x7b7   :  { %vm611_vm3 = vcmp.eq.f32.partialorder %v607_v13, %v610_v62  ;;  %v628_v9 = vadd.f32 %v610_v62, %v557_v33 }
 0x7b8   :  { %v612_v1 = vsel %vm611_vm3, %v1036_v63, 4 }
 0x7b9   :  { %v613_v2 = vsel %vm517_vm13, %v612_v1, 2147483647  ;;  %875 = vrcp.f32 %v628_v9  ;;  %vm754_vm13 = vcmask 441344  }
 0x7ba   :  { %v615_v3 = vshra.s32 %v613_v2, 16  ;;  %v614_v5 = vand.u32 65535, %v613_v2 }
 0x7bc   :  { %v617_v4 = vcvt.s32.f32 %v615_v3  ;;  %v616_v7 = vcvt.s32.f32 %v614_v5 }
 0x7be   :  { %618 = vmin.xlane.f32.xlu0 %v617_v4 }
 0x7c6   :  { %v876_v36 = vpop.eup %875 }
 0x7c7   :  { %v630_v16 = vmul.f32 %v876_v36, %v557_v33  ;;  %v631_v18 = vmul.f32 %v876_v36, %v610_v62 }
 0x7c9   :  { %v632_v19 = vsel %vm606_vm1, %v630_v16, 0.0  ;;  %v667_v32 = vsel %vm666_vm6, %v630_v16, %v631_v18 }
 0x847   :  { %v619_v6 = vpop.xlane.xlu0 %618 }
 0x848   :  { %vm620_vm4 = vcmp.eq.f32.partialorder %v617_v4, %v619_v6  ;;  %v625_v10 = vcvt.f32.s32 %v619_v6 }
 0x849   :  { %v621_v8 = vsel %vm620_vm4, %v616_v7, inf }
 0x84a   :  { %622 = vmin.xlane.f32.xlu0 %v621_v8  ;;  %v626_v12 = vshll.u32 %v625_v10, 16 }
 0x8d3   :  { %v623_v11 = vpop.xlane.xlu0 %622 }
 0x8d4   :  { %v624_v15 = vcvt.f32.s32 %v623_v11 }
 0x8d6   :  { %v627_v17 = vadd.s32 %v626_v12, %v624_v15 }
 0x8d8   :  { %vm633_vm5 = vcmp.eq.s32.totalorder %v1036_v63, %v627_v17  ;;  %v668_v30 = vsel %vm666_vm6, %v605_v60, %v627_v17 }
 0x8d9   :  { %v634_v21 = vsel %vm633_vm5, %v631_v18, 0.0  ;;  %v669_v31 = vcvt.s32.f32 %v668_v30 }
 0x8da   :  { %v635_v23 = vadd.f32 %v634_v21, %v632_v19 }
 0x8dc   :  { %v646_v25 = vrot.slane %v635_v23, %v1082_v14  ;;  %v639_v28 = vrot.slane %v635_v23, %v971_v45 }
 0x8de   :  { %648 = vbcast.lane.b32.xlu1 %v646_v25, 256  ;;  %641 = vbcast.lane.b32.xlu0 %v639_v28, 256 }
 0x8e2   :  { %734 = vrot.lane.b32.xlu1 %v669_v31, %s931_s0  ;;  %730 = vrot.lane.b32.xlu0 %v667_v32, %s932_s24 }
 0x950   :  { %v649_v33 = vpop.permute.xlu1 %648  ;;  %v642_v34 = vpop.permute.xlu0 %641 }
 0x951   :  { %v651_v35 = vmul.f32 %v649_v33, %v999_v20  ;;  %v650_v37 = vmul.f32 %v642_v34, %v1003_v24 }
 0x953   :  { %v659_v14 = vsel %vm397_vm8, %v651_v35, 0.0  ;;  %v652_v45 = vsel %vm397_vm8, %v650_v37, 0.0  ;;  %vm746_vm8 = vcmask 326656  }
 0x954   :  { %v660_v38 = vrot.slane %v659_v14, 4  ;;  %v653_v39 = vrot.slane %v652_v45, 4  ;;  %v731_v26 = vpop.permute.xlu0 %730  ;;  %v735_v60 = vpop.permute.xlu1 %734 }
 0x956   :  { %v661_v42 = vadd.f32 %v660_v38, %v659_v14  ;;  %v654_v43 = vadd.f32 %v653_v39, %v652_v45 }
 0x958   :  { %v662_v47 = vrot.slane %v661_v42, 2  ;;  %v655_v41 = vrot.slane %v654_v43, 2 }
 0x95a   :  { %v663_v48 = vadd.f32 %v662_v47, %v661_v42  ;;  %v656_v49 = vadd.f32 %v655_v41, %v654_v43 }
 0x95c   :  { %v664_v51 = vrot.slane %v663_v48, 1  ;;  %v657_v20 = vrot.slane %v656_v49, 1 }
 0x95e   :  { %v665_v52 = vadd.f32 %v664_v51, %v663_v48  ;;  %v658_v24 = vadd.f32 %v657_v20, %v656_v49 }
 0x960   :  { %v672_v55 = vsel %vm473_vm9, %v665_v52, %v658_v24 }
 0x961   :  { %v743_v63 = vsel %vm737_vm2, %v672_v55, %v1058_v29 }
 0x962   :  { %v745_v57 = vsel %vm744_vm7, %v743_v63, %v1053_v22 }
 0x963   :  { %v747_v40 = vsel %vm746_vm8, %v745_v57, %v1067_v46 }
 0x964   :  { %v749_v59 = vsel %vm748_vm10, %v747_v40, %v1075_v56 }
 0x965   :  { %v751_v27 = vsel %vm750_vm11, %v749_v59, %v727_v58 }
 0x966   :  { %v753_v13 = vsel %vm752_vm12, %v751_v27, %v731_v26 }
 0x967   :  { %v755_v29 = vsel %vm754_vm13, %v753_v13, %v735_v60 }
 0x968   :  { %v757_v61 = vsel %vm756_vm14, %v755_v29, 0.0 }
 0x969   :  { %v760_v22 = vcombine.low %v983_v0, %v757_v61 }
 0x96b   :  { %787 = vst.sshfl [vmem:[#allocation6] sm:$0x33 pattern:$0x76325410] %v760_v22 }
 0x96c   :  { %908 = shalt.err (!%p905_p9)
}
 0x96d   :  { %779 = dma.vmem_to_hbm [thread:$0]  %s777_s26, 64, %s1136_s3, [#allocation5]  }
 0x96e   :  { %919 = dma.done.wait [#allocation5], 64  }
 0x96f   :  { %920 = vsyncadd [#allocation5], 4294967232 }
 0x970   :  { %783 = vsyncpa [#allocation4], 1 }
 0x971   :  { %784 = vsyncpa [#allocation5], 1 }

</bundles_post_ra>
